<compile_context>
chip_gen: v7x
topology: tpu7x:2x2x1
jax: 0.10.0
libtpu: 0.0.40
codegen_flags: <defaults>
</compile_context>

<pallas_src>
import jax
import jax.numpy as jnp
from jax.experimental import pallas as pl
from jax.experimental.pallas import tpu as pltpu


def _distortion_loss_kernel(dist_ref, coords_ref, out_ref):
    d = dist_ref[0, 0]

    x0 = coords_ref[0]
    y0 = coords_ref[1]
    x1 = coords_ref[2]
    y1 = coords_ref[3]

    def project_x(x, y):
        # new_x = 2*x / (1 + sqrt(1 + 4*d*(x^2 + y^2)))
        s = jnp.sqrt(1.0 + 4.0 * d * (x * x + y * y))
        return (2.0 * x) / (1.0 + s)

    diff = project_x(x1, y1) - project_x(x0, y0)

    # Fold 100^2 (from "100 * (nx1 - nx0)") and 1/(M*N) (from the mean) into
    # one scalar scale applied to the reduced sum — no per-element scaling.
    n_elems = coords_ref.shape[1] * coords_ref.shape[2]
    scale = 10000.0 / float(n_elems)
    out_ref[0, 0] = jnp.sum(diff * diff) * scale


def distortion_loss(distortion, coordinate_norms):
    """coordinate_norms: sequence of (x, y) pairs; only pairs 0 and 1 feed the loss."""
    (x0, y0), (x1, y1) = coordinate_norms[0], coordinate_norms[1]
    dist = jnp.asarray(distortion, jnp.float32).reshape(1, 1)

    # Single stacked (4, M, N) f32 input -> one contiguous DMA into VMEM.
    coords = jnp.stack(
        [
            x0.astype(jnp.float32),
            y0.astype(jnp.float32),
            x1.astype(jnp.float32),
            y1.astype(jnp.float32),
        ],
        axis=0,
    )

    vmem_spec = pl.BlockSpec(memory_space=pltpu.VMEM)
    smem_spec = pl.BlockSpec(memory_space=pltpu.SMEM)

    out = pl.pallas_call(
        _distortion_loss_kernel,
        out_shape=jax.ShapeDtypeStruct((1, 1), jnp.float32),
        in_specs=[smem_spec, vmem_spec],
        out_specs=smem_spec,
    )(dist, coords)
    return out[0, 0]


def _reference_loss(distortion, coordinate_norms):
    # Bit-faithful transcription of the PyTorch forward (unsimplified form).
    def project_x(x, y, d):
        a = d * x * (1.0 + y ** 2 / x ** 2)
        c = -x
        return (-1.0 + jnp.sqrt(1.0 - 4.0 * a * c)) / (2.0 * a)

    nx = [project_x(x, y, distortion) for (x, y) in coordinate_norms]
    return jnp.mean((100.0 * (nx[1] - nx[0])) ** 2)


if __name__ == "__main__":
    key = jax.random.PRNGKey(0)
    k0, k1, k2, k3 = jax.random.split(key, 4)

    M, N = 8, 128
    # keep x well away from zero and positive so the reference's y^2/x^2 and
    # sqrt argument are well-conditioned (same regime the module expects)
    x0 = jax.random.uniform(k0, (M, N), jnp.float32, minval=0.5, maxval=1.5)
    y0 = jax.random.uniform(k1, (M, N), jnp.float32, minval=0.5, maxval=1.5)
    x1 = jax.random.uniform(k2, (M, N), jnp.float32, minval=0.5, maxval=1.5)
    y1 = jax.random.uniform(k3, (M, N), jnp.float32, minval=0.5, maxval=1.5)
    distortion = jnp.float32(0.1)

    coords = [(x0, y0), (x1, y1)]

    loss = distortion_loss(distortion, coords)
    loss = jax.block_until_ready(loss)

    ref = _reference_loss(distortion, coords)
    assert jnp.allclose(loss, ref, rtol=1e-5, atol=1e-5), (loss, ref)

    print("KERNEL_OK")
</pallas_src>

<mosaic_0001>
module attributes {stable_mosaic.version = 11 : i64} {
  func.func @_distortion_loss_kernel(%arg0: memref<1x1xf32, #tpu.memory_space<smem>>, %arg1: memref<4x8x128xf32, #tpu.memory_space<vmem>>, %arg2: memref<1x1xf32, #tpu.memory_space<smem>>) attributes {dimension_semantics = [], scalar_prefetch = 0 : i64, scratch_operands = 0 : i64, tpu.core_type = #tpu.core_type<tc>} {
    %c0 = arith.constant 0 : index
    %c0_0 = arith.constant 0 : index
    %0 = memref.load %arg0[%c0, %c0_0] : memref<1x1xf32, #tpu.memory_space<smem>>
    %c0_1 = arith.constant 0 : index
    %c0_2 = arith.constant 0 : index
    %c0_3 = arith.constant 0 : index
    %1 = vector.load %arg1[%c0_1, %c0_2, %c0_3] : memref<4x8x128xf32, #tpu.memory_space<vmem>>, vector<1x8x128xf32>
    %2 = vector.shape_cast %1 : vector<1x8x128xf32> to vector<8x128xf32>
    %c1 = arith.constant 1 : index
    %c0_4 = arith.constant 0 : index
    %c0_5 = arith.constant 0 : index
    %3 = vector.load %arg1[%c1, %c0_4, %c0_5] : memref<4x8x128xf32, #tpu.memory_space<vmem>>, vector<1x8x128xf32>
    %4 = vector.shape_cast %3 : vector<1x8x128xf32> to vector<8x128xf32>
    %c2 = arith.constant 2 : index
    %c0_6 = arith.constant 0 : index
    %c0_7 = arith.constant 0 : index
    %5 = vector.load %arg1[%c2, %c0_6, %c0_7] : memref<4x8x128xf32, #tpu.memory_space<vmem>>, vector<1x8x128xf32>
    %6 = vector.shape_cast %5 : vector<1x8x128xf32> to vector<8x128xf32>
    %c3 = arith.constant 3 : index
    %c0_8 = arith.constant 0 : index
    %c0_9 = arith.constant 0 : index
    %7 = vector.load %arg1[%c3, %c0_8, %c0_9] : memref<4x8x128xf32, #tpu.memory_space<vmem>>, vector<1x8x128xf32>
    %8 = vector.shape_cast %7 : vector<1x8x128xf32> to vector<8x128xf32>
    %cst = arith.constant 4.000000e+00 : f32
    %9 = arith.mulf %cst, %0 : f32
    %10 = arith.mulf %6, %6 : vector<8x128xf32>
    %11 = arith.mulf %8, %8 : vector<8x128xf32>
    %12 = arith.addf %10, %11 : vector<8x128xf32>
    %13 = vector.broadcast %9 : f32 to vector<8x128xf32>
    %14 = arith.mulf %13, %12 : vector<8x128xf32>
    %cst_10 = arith.constant 1.000000e+00 : f32
    %15 = vector.broadcast %cst_10 : f32 to vector<8x128xf32>
    %16 = arith.addf %15, %14 : vector<8x128xf32>
    %17 = math.sqrt %16 : vector<8x128xf32>
    %cst_11 = arith.constant 2.000000e+00 : f32
    %18 = vector.broadcast %cst_11 : f32 to vector<8x128xf32>
    %19 = arith.mulf %18, %6 : vector<8x128xf32>
    %cst_12 = arith.constant 1.000000e+00 : f32
    %20 = vector.broadcast %cst_12 : f32 to vector<8x128xf32>
    %21 = arith.addf %20, %17 : vector<8x128xf32>
    %22 = arith.divf %19, %21 : vector<8x128xf32>
    %cst_13 = arith.constant 4.000000e+00 : f32
    %23 = arith.mulf %cst_13, %0 : f32
    %24 = arith.mulf %2, %2 : vector<8x128xf32>
    %25 = arith.mulf %4, %4 : vector<8x128xf32>
    %26 = arith.addf %24, %25 : vector<8x128xf32>
    %27 = vector.broadcast %23 : f32 to vector<8x128xf32>
    %28 = arith.mulf %27, %26 : vector<8x128xf32>
    %cst_14 = arith.constant 1.000000e+00 : f32
    %29 = vector.broadcast %cst_14 : f32 to vector<8x128xf32>
    %30 = arith.addf %29, %28 : vector<8x128xf32>
    %31 = math.sqrt %30 : vector<8x128xf32>
    %cst_15 = arith.constant 2.000000e+00 : f32
    %32 = vector.broadcast %cst_15 : f32 to vector<8x128xf32>
    %33 = arith.mulf %32, %2 : vector<8x128xf32>
    %cst_16 = arith.constant 1.000000e+00 : f32
    %34 = vector.broadcast %cst_16 : f32 to vector<8x128xf32>
    %35 = arith.addf %34, %31 : vector<8x128xf32>
    %36 = arith.divf %33, %35 : vector<8x128xf32>
    %37 = arith.subf %22, %36 : vector<8x128xf32>
    %38 = arith.mulf %37, %37 : vector<8x128xf32>
    %39 = vector.shape_cast %38 : vector<8x128xf32> to vector<1x8x128xf32>
    %cst_17 = arith.constant dense<0.000000e+00> : vector<1xf32>
    %40 = vector.multi_reduction <add>, %39, %cst_17 [1, 2] : vector<1x8x128xf32> to vector<1xf32>
    %41 = vector.shape_cast %40 : vector<1xf32> to vector<1x1x1xf32>
    %42 = vector.extract %41[0, 0, 0] : f32 from vector<1x1x1xf32>
    %cst_18 = arith.constant 9.765625 : f32
    %43 = arith.mulf %42, %cst_18 : f32
    %c0_19 = arith.constant 0 : index
    %c0_20 = arith.constant 0 : index
    %44 = memref.load %arg2[%c0_19, %c0_20] : memref<1x1xf32, #tpu.memory_space<smem>>
    memref.store %43, %arg2[%c0_19, %c0_20] : memref<1x1xf32, #tpu.memory_space<smem>>
    return
  }
}

</mosaic_0001>

<bundles_post_ra>
// kernel: tpu_custom_call.1
= control target key start
LH: loop header
LB: loop body
LE: loop exit
PB: predicated region body
PF: predicated region fallthrough
CT: control target
= control target key end

     0   :  { %8 = vsyncpa [#allocation4], 0  ;;  %s193_s0 = inlined_call_operand.<no memory space> [shape: f32[1,1], index: 0, kind: input, shape index: {}]   ;;  %s194_s1 = inlined_call_operand.hbm [shape: f32[4,8,128], index: 1, kind: input, shape index: {}]   ;;  %s195_s2 = inlined_call_operand.hbm [shape: f32[1,1], index: 2, kind: output, shape index: {}]  }
   0x1   :  { %9 = vsyncpa [#allocation5], 0  ;;  %s147_s9 = smov [#allocation3]   ;;  %s111_s13 = scalar_lea.hbm %s194_s1, 512 }
   0x2   :  { %s17_s10 = sshll.u32 %s147_s9, 4  ;;  %p112_p0 = scmp.ne.s32.totalorder %s194_s1, %s111_s13  ;;  %s18_s10 = int_to_ptr.vmem [resolvable:$true] %s17_s10 }
   0x3   :  { %p115_p1 = scmp.lt.u32.totalorder %s111_s13, %s194_s1 }
   0x5   :  { %p117_p2 = pnand %p115_p1, %p112_p0 }
   0x7   :  { %120 = shalt.err (!%p117_p2)
}
   0x8   :  { %s121_s18 = scalar_lea.vmem %s18_s10, 512  ;;  %p126_p4 = scmp.lt.s32.totalorder %s18_s10, %s18_s10 }
   0x9   :  { %p122_p3 = scmp.ne.s32.totalorder %s18_s10, %s121_s18  ;;  %p127_p5 = scmp.lt.s32.totalorder %s121_s18, %s121_s18 }
   0xb   :  { %p128_p6 = por %p127_p5, %p126_p4 }
   0xd   :  { %p129_p7 = pnand %p128_p6, %p122_p3 }
   0xf   :  { %132 = shalt.err (!%p129_p7)
}
  0x10   :  { %s148_s19 = smov 128   ;;  %s149_s20 = smov 8  }
  0x11   :  { %23 = dma.hbm_to_vmem [thread:$0]  %s194_s1, 512, %s18_s10, [#allocation4], %s148_s19, %s148_s19, %s149_s20  }
  0x12   :  { %143 = dma.done.wait [#allocation4], 512  }
  0x13   :  { %144 = vsyncadd [#allocation4], 4294966784  ;;  %s35_s25 = smul.f32 4.0, %s193_s0  ;;  %v28_v0 = vld [vmem:[#allocation3] sm:$0xff]  ;;  %v30_v1 = vld [vmem:[#allocation3 + $0x8] sm:$0xff]  ;;  %s133_s28 = scalar_lea.hbm %s195_s2, 16 }
  0x14   :  { %v32_v2 = vld [vmem:[#allocation3 + $0x10] sm:$0xff]  ;;  %v34_v3 = vld [vmem:[#allocation3 + $0x18] sm:$0xff]  ;;  %v53_v5 = vmul.f32 %v28_v0, %v28_v0  ;;  %v54_v6 = vmul.f32 %v30_v1, %v30_v1  ;;  %v65_v27 = vmul.f32 2.0, %v28_v0  ;;  %p134_p8 = scmp.ne.s32.totalorder %s195_s2, %s133_s28  ;;  %p137_p9 = scmp.lt.u32.totalorder %s133_s28, %s195_s2 }
  0x15   :  { %v36_v4 = vmul.f32 %v32_v2, %v32_v2  ;;  %v37_v7 = vmul.f32 %v34_v3, %v34_v3  ;;  %v39_v8 = vstv %s35_s25  ;;  %v49_v28 = vmul.f32 2.0, %v32_v2 }
  0x16   :  { %v55_v9 = vadd.f32 %v54_v6, %v53_v5  ;;  %p139_p10 = pnand %p137_p9, %p134_p8 }
  0x17   :  { %v38_v10 = vadd.f32 %v37_v7, %v36_v4 }
  0x18   :  { %v56_v11 = vmul.f32 %v55_v9, %v39_v8 }
  0x19   :  { %v40_v12 = vmul.f32 %v39_v8, %v38_v10 }
  0x1a   :  { %v57_v13 = vadd.f32 1.0, %v56_v11 }
  0x1b   :  { %v41_v14 = vadd.f32 1.0, %v40_v12 }
  0x1c   :  { %103 = vrsqrt.f32 %v57_v13  ;;  %vm60_vm0 = vcmp.eq.f32.partialorder %v57_v13, inf  ;;  %v63_v16 = vand.u32 2147483648, %v57_v13  ;;  %vm62_vm2 = vcmp.eq.f32.partialorder %v57_v13, 0.0 }
  0x1d   :  { %105 = vrsqrt.f32 %v41_v14  ;;  %vm44_vm1 = vcmp.eq.f32.partialorder %v41_v14, inf  ;;  %v47_v18 = vand.u32 2147483648, %v41_v14  ;;  %vm46_vm3 = vcmp.eq.f32.partialorder %v41_v14, 0.0 }
  0x26   :  { %v104_v15 = vpop.eup %103 }
  0x27   :  { %v106_v17 = vpop.eup %105  ;;  %v59_v19 = vmul.f32 %v104_v15, %v57_v13 }
  0x28   :  { %v43_v20 = vmul.f32 %v106_v17, %v41_v14 }
  0x29   :  { %v61_v21 = vsel %vm60_vm0, %v57_v13, %v59_v19 }
  0x2a   :  { %v45_v22 = vsel %vm44_vm1, %v41_v14, %v43_v20  ;;  %v64_v23 = vsel %vm62_vm2, %v63_v16, %v61_v21 }
  0x2b   :  { %v48_v24 = vsel %vm46_vm3, %v47_v18, %v45_v22  ;;  %v66_v25 = vadd.f32 1.0, %v64_v23 }
  0x2c   :  { %v50_v26 = vadd.f32 1.0, %v48_v24 }
  0x2d   :  { %107 = vrcp.f32 %v66_v25 }
  0x2e   :  { %109 = vrcp.f32 %v50_v26 }
  0x37   :  { %v108_v29 = vpop.eup %107 }
  0x38   :  { %v110_v30 = vpop.eup %109  ;;  %v68_v31 = vmul.f32 %v108_v29, %v65_v27 }
  0x39   :  { %v52_v32 = vmul.f32 %v110_v30, %v49_v28 }
  0x3b   :  { %v69_v33 = vsub.f32 %v52_v32, %v68_v31 }
  0x3d   :  { %v70_v34 = vmul.f32 %v69_v33, %v69_v33 }
  0x3f   :  { %71 = vadd.xlane.f32.xlu0 %v70_v34 }
  0xcc   :  { %v72_v35 = vpop.xlane.xlu0 %71 }
  0xcd   :  { %v73_v36 = vrot.slane %v72_v35, 4 }
  0xcf   :  { %v74_v37 = vadd.f32 %v73_v36, %v72_v35 }
  0xd1   :  { %v75_v38 = vrot.slane %v74_v37, 2 }
  0xd3   :  { %v76_v39 = vadd.f32 %v75_v38, %v74_v37 }
  0xd5   :  { %v77_v40 = vrot.slane %v76_v39, 1 }
  0xd7   :  { %v78_v41 = vadd.f32 %v77_v40, %v76_v39 }
  0xd9   :  { %97 = vpush %v78_v41 }
 0x10a   :  { %s98_s0 = spop %97 }
 0x10b   :  { %s80_s1 = smul.f32 9.765625, %s98_s0 }
 0x10d   :  { %82 = sst [smem:[#allocation6]] %s80_s1 }
 0x10e   :  { %142 = shalt.err (!%p139_p10)
}
 0x10f   :  { %s150_s5 = smov [#allocation6]  }
 0x110   :  { %90 = dma.smem_to_hbm %s150_s5, 16, %s195_s2, [#allocation5]  }
 0x111   :  { %145 = dma.done.wait [#allocation5], 16  }
 0x112   :  { %146 = vsyncadd [#allocation5], 4294967280 }
 0x113   :  { %94 = sfence }
 0x114   :  { %95 = vsyncpa [#allocation4], 1 }
 0x115   :  { %96 = vsyncpa [#allocation5], 1 }

</bundles_post_ra>
